<compile_context>
chip_gen: v7x
topology: tpu7x:2x2x1
jax: 0.10.0
libtpu: 0.0.40
codegen_flags: <defaults>
</compile_context>

<pallas_src>
import re

import jax
import jax.numpy as jnp
from jax.experimental import pallas as pl
from jax.experimental.pallas import tpu as pltpu


def _tpu_generation():
    """Best-effort TPU generation (5, 6, 7, ...); 0 if unknown."""
    try:
        kind = jax.devices()[0].device_kind.lower()
    except Exception:
        return 0
    m = re.search(r"v(\d+)", kind)
    return int(m.group(1)) if m else 0


def _make_kernel(has_bias, row_broadcast, compute_dtype):
    """y = x * w (+ b), with w/b broadcast along lanes (col) or sublanes (row)."""

    def kernel(x_ref, wb_ref, o_ref):
        x = x_ref[...].astype(compute_dtype)
        wb = wb_ref[...]
        if row_broadcast:
            y = x * wb[0:1, :]
            if has_bias:
                y = y + wb[1:2, :]
        else:
            y = x * wb[:, 0:1]
            if has_bias:
                y = y + wb[:, 1:2]
        o_ref[...] = y.astype(o_ref.dtype)

    return kernel


def _choose_tiles(M, L, itemsize, target_block_bytes, sublane):
    """Pick (tm, tl) tiles that are (sublane,128)-legal and fit a byte budget."""
    # Lane (last) axis: prefer the full extent (longest contiguous DMA rows,
    # fewest grid steps); only cap it if even a minimal sublane strip would
    # blow the budget, and then keep it a multiple of 128.
    if L <= 128 or L * itemsize * sublane <= target_block_bytes:
        tl = L
    else:
        tl = (target_block_bytes // (itemsize * sublane * 128)) * 128
        tl = max(128, min(tl, (L // 128) * 128))
    # Sublane (second-to-last) axis: largest multiple of `sublane` that fits.
    rows = max(1, target_block_bytes // max(1, tl * itemsize))
    if rows >= M:
        tm = M
    else:
        tm = max(sublane, (rows // sublane) * sublane)
    return tm, tl


def _ensure_two_blocks(M, L, tm, tl, sublane):
    """Shrink a (1,1) grid so a dual-TensorCore chip (v7x) can shard it."""
    if pl.cdiv(M, tm) * pl.cdiv(L, tl) >= 2:
        return tm, tl
    if tm >= 2 * sublane:                         # prefer splitting rows
        half = -(-(tm // 2) // sublane) * sublane
        return half, tl
    if tl >= 256:                                 # else split lanes (128-aligned)
        half = -(-(tl // 2) // 128) * 128
        return tm, half
    return tm, tl                                 # too small to matter


def layer_scale(x_nchw, weight, bias=None, *, target_block_bytes=None):
    """y[n,c,h,w] = x[n,c,h,w] * weight[c] + bias[c]  (grouped 1x1 conv)."""
    N, C, H, W = x_nchw.shape
    dtype = x_nchw.dtype
    itemsize = jnp.dtype(dtype).itemsize
    has_bias = bias is not None
    HW = H * W

    gen = _tpu_generation()
    if target_block_bytes is None:
        # v7x: 3.2 TB/s HBM makes fixed per-step overhead visible -> bigger blocks.
        target_block_bytes = (4 << 20) if gen >= 7 else (2 << 20)
    vmem_limit = (40 << 20) if gen >= 7 else None

    # bf16 VALU exists on v6e/v7x -> compute natively there; otherwise f32.
    native_bf16 = (dtype == jnp.bfloat16) and gen >= 6
    compute_dtype = dtype if native_bf16 else jnp.float32

    w = jnp.asarray(weight, dtype=compute_dtype).reshape(C)
    b = jnp.asarray(bias, dtype=compute_dtype).reshape(C) if has_bias else None

    # Layout selection: keep the lane (last) axis dense.
    row_broadcast = (HW % 128 != 0)
    if row_broadcast:
        # (N, C*H*W) view: params repeated along lanes, broadcast over sublanes.
        M, L = N, C * HW
        x2d = x_nchw.reshape(M, L)
        rows = [jnp.repeat(w, HW)]
        if has_bias:
            rows.append(jnp.repeat(b, HW))
        wb = jnp.stack(rows, axis=0)                      # (1|2, C*H*W)
    else:
        # (N*C, H*W) view: params as per-row columns, broadcast over lanes.
        M, L = N * C, HW
        x2d = x_nchw.reshape(M, L)
        cols = [w]
        if has_bias:
            cols.append(b)
        wb = jnp.tile(jnp.stack(cols, axis=-1), (N, 1))   # (N*C, 1|2)
    nparams = 2 if has_bias else 1

    # Packed-sublane-aware tile rounding: 8 (32-bit), 16 (bf16), 32 (int8).
    sublane = max(8, 32 // itemsize)
    tm, tl = _choose_tiles(M, L, itemsize, target_block_bytes, sublane)
    if gen >= 7:
        tm, tl = _ensure_two_blocks(M, L, tm, tl, sublane)
    grid = (pl.cdiv(M, tm), pl.cdiv(L, tl))               # lane axis innermost

    x_spec = pl.BlockSpec((tm, tl), lambda i, j: (i, j))
    out_spec = pl.BlockSpec((tm, tl), lambda i, j: (i, j))
    if row_broadcast:
        wb_spec = pl.BlockSpec((nparams, tl), lambda i, j: (0, j))
    else:
        # Constant across the inner lane loop -> not re-DMA'd per step.
        wb_spec = pl.BlockSpec((tm, nparams), lambda i, j: (i, 0))

    cp = dict(dimension_semantics=("parallel", "parallel"))
    if vmem_limit is not None:
        cp["vmem_limit_bytes"] = vmem_limit

    out2d = pl.pallas_call(
        _make_kernel(has_bias, row_broadcast, compute_dtype),
        out_shape=jax.ShapeDtypeStruct((M, L), dtype),
        grid_spec=pltpu.PrefetchScalarGridSpec(
            num_scalar_prefetch=0,
            grid=grid,
            in_specs=[x_spec, wb_spec],
            out_specs=out_spec,
        ),
        compiler_params=pltpu.CompilerParams(**cp),
    )(x2d, wb)

    return out2d.reshape(N, C, H, W)


if __name__ == "__main__":
    key = jax.random.PRNGKey(0)

    N, C, H, W = 2, 4, 16, 16
    dim = C
    init_value = 1e-5

    x = jax.random.normal(key, (N, C, H, W), dtype=jnp.float32)

    # Deterministic parameters matching LayerScale.__init__:
    #   weight = ones(dim,1,1,1) * init_value ; bias = zeros(dim)
    weight = jnp.ones((dim, 1, 1, 1), dtype=jnp.float32) * init_value
    bias = jnp.zeros((dim,), dtype=jnp.float32)

    w_b = weight.reshape(1, C, 1, 1)
    b_b = bias.reshape(1, C, 1, 1)

    # With bias (enable_bias=True); H*W = 256 -> (N*C, H*W) column path.
    y = jax.block_until_ready(layer_scale(x, weight, bias))
    assert y.shape == (N, C, H, W)
    assert jnp.allclose(y, x * w_b + b_b, atol=1e-6, rtol=1e-6)

    # Without bias (enable_bias=False).
    y_nb = jax.block_until_ready(layer_scale(x, weight, None))
    assert jnp.allclose(y_nb, x * w_b, atol=1e-6, rtol=1e-6)

    # Small / non-128-multiple spatial size -> lane-dense (N, C*H*W) row path.
    x7 = jax.random.normal(jax.random.PRNGKey(0), (N, C, 7, 7), dtype=jnp.float32)
    y7 = jax.block_until_ready(layer_scale(x7, weight, bias))
    assert jnp.allclose(y7, x7 * w_b + b_b, atol=1e-6, rtol=1e-6)

    print("KERNEL_OK")
</pallas_src>

<mosaic_0001>
module attributes {stable_mosaic.version = 11 : i64} {
  func.func @kernel(%arg0: i32, %arg1: i32, %arg2: memref<8x256xf32, #tpu.memory_space<vmem>>, %arg3: memref<8x2xf32, #tpu.memory_space<vmem>>, %arg4: memref<8x256xf32, #tpu.memory_space<vmem>>) attributes {dimension_semantics = [#tpu.dimension_semantics<parallel>, #tpu.dimension_semantics<parallel>], iteration_bounds = array<i64: 1, 1>, scalar_prefetch = 0 : i64, scratch_operands = 0 : i64, tpu.core_type = #tpu.core_type<tc>, window_params = [{transform_indices = @transform_0, window_bounds = array<i64: 8, 256>}, {transform_indices = @transform_1, window_bounds = array<i64: 8, 2>}, {transform_indices = @transform_2, window_bounds = array<i64: 8, 256>}]} {
    %c0 = arith.constant 0 : index
    %c0_0 = arith.constant 0 : index
    %0 = vector.load %arg2[%c0, %c0_0] : memref<8x256xf32, #tpu.memory_space<vmem>>, vector<8x256xf32>
    %c0_1 = arith.constant 0 : index
    %c0_2 = arith.constant 0 : index
    %1 = vector.load %arg3[%c0_1, %c0_2] : memref<8x2xf32, #tpu.memory_space<vmem>>, vector<8x2xf32>
    %2 = vector.extract_strided_slice %1 {offsets = [0, 0], sizes = [8, 1], strides = [1, 1]} : vector<8x2xf32> to vector<8x1xf32>
    %3 = vector.broadcast %2 : vector<8x1xf32> to vector<8x256xf32>
    %4 = arith.mulf %0, %3 : vector<8x256xf32>
    %5 = vector.extract_strided_slice %1 {offsets = [0, 1], sizes = [8, 1], strides = [1, 1]} : vector<8x2xf32> to vector<8x1xf32>
    %6 = vector.broadcast %5 : vector<8x1xf32> to vector<8x256xf32>
    %7 = arith.addf %4, %6 : vector<8x256xf32>
    %c0_3 = arith.constant 0 : index
    %c0_4 = arith.constant 0 : index
    %8 = vector.load %arg4[%c0_3, %c0_4] : memref<8x256xf32, #tpu.memory_space<vmem>>, vector<8x256xf32>
    tpu.vector_store %arg4[%c0_3, %c0_4], %7 {strides = array<i32>} : memref<8x256xf32, #tpu.memory_space<vmem>>, vector<8x256xf32>,
    return
  }
  func.func @transform_0(%arg0: i32, %arg1: i32) -> (i32, i32) {
    %c0_i32 = arith.constant 0 : i32
    return %arg0, %arg1 : i32, i32
  }
  func.func @transform_1(%arg0: i32, %arg1: i32) -> (i32, i32) {
    %c0_i32 = arith.constant 0 : i32
    %c0_i32_0 = arith.constant 0 : i32
    return %arg0, %c0_i32 : i32, i32
  }
  func.func @transform_2(%arg0: i32, %arg1: i32) -> (i32, i32) {
    %c0_i32 = arith.constant 0 : i32
    return %arg0, %arg1 : i32, i32
  }
}

</mosaic_0001>

<bundles_post_ra>
// kernel: tpu_custom_call.1
= control target key start
LH: loop header
LB: loop body
LE: loop exit
PB: predicated region body
PF: predicated region fallthrough
CT: control target
= control target key end

     0   :  { %7 = vsyncpa [#allocation3], 0  ;;  %s157_s0 = inlined_call_operand.hbm [shape: f32[8,256], index: 0, kind: input, shape index: {}]   ;;  %s158_s1 = inlined_call_operand.vmem [shape: f32[8,2], index: 1, kind: input, shape index: {}]   ;;  %s159_s2 = inlined_call_operand.hbm [shape: f32[8,256], index: 2, kind: output, shape index: {}]  }
   0x1   :  { %8 = vsyncpa [#allocation4], 0  ;;  %s111_s9 = smov [#allocation2]   ;;  %s63_s13 = scalar_lea.hbm %s157_s0, 256 }
   0x2   :  { %s15_s10 = sshll.u32 %s111_s9, 4  ;;  %p64_p0 = scmp.ne.s32.totalorder %s157_s0, %s63_s13  ;;  %s16_s10 = int_to_ptr.vmem [resolvable:$true] %s15_s10 }
   0x3   :  { %p67_p1 = scmp.lt.u32.totalorder %s63_s13, %s157_s0 }
   0x5   :  { %p69_p2 = pnand %p67_p1, %p64_p0 }
   0x7   :  { %72 = shalt.err (!%p69_p2)
}
   0x8   :  { %s73_s18 = scalar_lea.vmem %s16_s10, 256  ;;  %p78_p4 = scmp.lt.s32.totalorder %s16_s10, %s16_s10 }
   0x9   :  { %p74_p3 = scmp.ne.s32.totalorder %s16_s10, %s73_s18  ;;  %p79_p5 = scmp.lt.s32.totalorder %s73_s18, %s73_s18 }
   0xb   :  { %p80_p6 = por %p79_p5, %p78_p4 }
   0xd   :  { %p81_p7 = pnand %p80_p6, %p74_p3 }
   0xf   :  { %84 = shalt.err (!%p81_p7)
}
  0x10   :  { %18 = dma.hbm_to_vmem [thread:$0]  %s157_s0, 256, %s16_s10, [#allocation3]  }
  0x11   :  { %107 = dma.done.wait [#allocation3], 256  }
  0x12   :  { %108 = vsyncadd [#allocation3], 4294967040  ;;  %v112_v0 = vmov 0   ;;  %v26_v1 = vld [vmem:[%s158_s1] sm:$0xff]  ;;  %v113_v2 = vmov 1   ;;  %v25_v5 = vld [vmem:[#allocation2 + $0x8] sm:$0xff] }
  0x13   :  { %61 = vset.pattern.permute.xlu0 %v112_v0  ;;  %v24_v4 = vld [vmem:[#allocation2] sm:$0xff]  ;;  %s114_s23 = smov [#allocation5]  }
  0x14   :  { %29 = vperm.xlu0 %61, %v26_v1   ;;  %s48_s24 = sshll.u32 %s114_s23, 4  ;;  %s49_s24 = int_to_ptr.vmem [resolvable:$true] %s48_s24 }
  0x15   :  { %s85_s0 = scalar_lea.vmem %s49_s24, 256  ;;  %p90_p9 = scmp.lt.s32.totalorder %s49_s24, %s49_s24 }
  0x16   :  { %p86_p8 = scmp.ne.s32.totalorder %s49_s24, %s85_s0  ;;  %p91_p10 = scmp.lt.s32.totalorder %s85_s0, %s85_s0 }
  0x18   :  { %62 = vset.pattern.permute.xlu0 %v113_v2  ;;  %p92_p11 = por %p91_p10, %p90_p9 }
  0x19   :  { %35 = vperm.xlu0 %62, %v26_v1  }
  0x1a   :  { %p93_p12 = pnand %p92_p11, %p86_p8 }
  0x93   :  { %v30_v3 = vpop.permute.xlu0 %29 }
  0x94   :  { %v32_v6 = vmul.f32 %v30_v3, %v24_v4  ;;  %v33_v7 = vmul.f32 %v30_v3, %v25_v5 }
  0x98   :  { %v36_v8 = vpop.permute.xlu0 %35 }
  0x99   :  { %v38_v9 = vadd.f32 %v36_v8, %v32_v6  ;;  %v39_v10 = vadd.f32 %v36_v8, %v33_v7 }
  0x9b   :  { %40 = vst [vmem:[#allocation5] sm:$0xff] %v38_v9  ;;  %41 = vst [vmem:[#allocation5 + $0x8] sm:$0xff] %v39_v10 }
  0x9c   :  { %96 = shalt.err (!%p93_p12)
}
  0x9d   :  { %s97_s26 = scalar_lea.hbm %s159_s2, 256 }
  0x9e   :  { %p98_p13 = scmp.ne.s32.totalorder %s159_s2, %s97_s26  ;;  %p101_p0 = scmp.lt.u32.totalorder %s97_s26, %s159_s2 }
  0xa0   :  { %p103_p1 = pnand %p101_p0, %p98_p13 }
  0xa2   :  { %106 = shalt.err (!%p103_p1)
}
  0xa3   :  { %51 = dma.vmem_to_hbm [thread:$0]  %s49_s24, 256, %s159_s2, [#allocation4]  }
  0xa4   :  { %109 = dma.done.wait [#allocation4], 256  }
  0xa5   :  { %110 = vsyncadd [#allocation4], 4294967040 }
  0xa6   :  { %55 = vsyncpa [#allocation3], 1 }
  0xa7   :  { %56 = vsyncpa [#allocation4], 1 }

</bundles_post_ra>
